<compile_context>
chip_gen: v6e
topology: v6e:2x2x1
jax: 0.10.0
libtpu: 0.0.40
codegen_flags: <defaults>
</compile_context>

<pallas_src>
import functools

import jax
import jax.numpy as jnp
from jax.experimental import pallas as pl
from jax.experimental.pallas import tpu as pltpu

_LANES = 128
_SUBLANES = 8
_ROW_ALIGN_ELEMS = _SUBLANES * _LANES          # 1024: keeps R a multiple of 8
_TARGET_BLOCK_BYTES = 2 * 1024 * 1024          # ~2 MiB/block ~= HBM roofline plateau


def _soft_dice_kernel(logits_ref, labels_ref, numer_ref, denor_ref, *,
                      p, tr, tiles_per_chunk, n_valid, mask_needed,
                      approx_sigmoid):
    j = pl.program_id(2)

    # First spatial tile of this (chunk, sample): zero the resident partials.
    @pl.when(j == 0)
    def _():
        numer_ref[...] = jnp.zeros_like(numer_ref)
        denor_ref[...] = jnp.zeros_like(denor_ref)

    logits = logits_ref[0].astype(jnp.float32)   # (tr, 128)
    labels = labels_ref[0].astype(jnp.float32)   # (tr, 128)

    if approx_sigmoid:
        # exp on the EUP + approximate vrcp: keeps the divide off the VALU.
        probs = pl.reciprocal(1.0 + jnp.exp(-logits), approx=True)
    else:
        probs = jax.nn.sigmoid(logits)

    if p == 1:
        pow_probs = probs
    elif p == 2:
        pow_probs = probs * probs                # VALU, not EUP
    else:
        pow_probs = probs ** p

    prod = probs * labels
    den = pow_probs + labels

    if mask_needed:
        # Ragged tail handled in-kernel (no wrapper pad-to-tile copy): zero
        # every element whose per-sample flat index is >= the true length.
        c = pl.program_id(0)
        tile = c * tiles_per_chunk + j
        rows = jax.lax.broadcasted_iota(jnp.int32, (tr, _LANES), 0) + tile * tr
        lanes = jax.lax.broadcasted_iota(jnp.int32, (tr, _LANES), 1)
        valid = rows * _LANES + lanes < n_valid
        prod = jnp.where(valid, prod, 0.0)
        den = jnp.where(valid, den, 0.0)

    # Fold (tr, 128) -> (8, 128) with sublane-aligned VPU adds only and
    # accumulate into the resident output block (no XLU reduction in-kernel).
    k = tr // _SUBLANES
    numer_ref[0, 0] += jnp.sum(prod.reshape(k, _SUBLANES, _LANES), axis=0)
    denor_ref[0, 0] += jnp.sum(den.reshape(k, _SUBLANES, _LANES), axis=0)


def soft_dice_loss_v1(logits, labels, *, p=1, smooth=1.0, reduction="mean",
                      downcast_labels=True, approx_sigmoid=True,
                      max_block_rows=None):
    """Pallas TPU equivalent of SoftDiceLossV1.forward (logits/labels: (N,H,W))."""
    assert logits.shape == labels.shape and logits.ndim == 3
    N, H, W = logits.shape
    L = H * W

    # Binary labels are exactly representable in bf16 -> halve label HBM reads.
    # (Disable for soft, non-{0,1} labels.)
    if downcast_labels and labels.dtype == jnp.float32:
        labels = labels.astype(jnp.bfloat16)

    logits2 = logits.reshape(N, L)
    labels2 = labels.reshape(N, L)

    # Pad only to the next 8*128-element boundary and only when required for
    # the lane-dense reshape; pad value is irrelevant (masked in-kernel).
    L_pad = pl.cdiv(L, _ROW_ALIGN_ELEMS) * _ROW_ALIGN_ELEMS
    if L_pad != L:
        logits2 = jnp.pad(logits2, ((0, 0), (0, L_pad - L)))
        labels2 = jnp.pad(labels2, ((0, 0), (0, L_pad - L)))
    R = L_pad // _LANES
    logits3 = logits2.reshape(N, R, _LANES)
    labels3 = labels2.reshape(N, R, _LANES)

    # Dtype-aware spatial tile: ~2 MiB of logits per block (rows multiple of
    # 32), or the whole sample if smaller.  Double-buffered VMEM use stays
    # well under the 32 MiB scoped limit on every generation (v7x included).
    if max_block_rows is None:
        max_block_rows = max(
            32,
            (_TARGET_BLOCK_BYTES // (_LANES * logits3.dtype.itemsize)) // 32 * 32)
    assert max_block_rows % _SUBLANES == 0
    TR = min(max_block_rows, R)
    num_tiles = pl.cdiv(R, TR)

    # v7x: when the batch alone cannot feed both TensorCores, split the
    # spatial tiles across a second "parallel" axis of size 2 as well.
    C = 2 if (N % 2 != 0 and num_tiles >= 2) else 1
    tiles_per_chunk = pl.cdiv(num_tiles, C)
    last_tile = num_tiles - 1
    mask_needed = (C * tiles_per_chunk * TR * _LANES) != L

    def in_index_map(c, i, j):
        t = c * tiles_per_chunk + j
        if C > 1:
            # Redundant trailing tiles of the last chunk are clamped to a
            # valid block; their contribution is fully masked in the kernel.
            t = jnp.minimum(t, last_tile)
        return (i, t, 0)

    kernel = functools.partial(
        _soft_dice_kernel, p=p, tr=TR, tiles_per_chunk=tiles_per_chunk,
        n_valid=L, mask_needed=mask_needed, approx_sigmoid=approx_sigmoid)

    numer_part, denor_part = pl.pallas_call(
        kernel,
        out_shape=(
            jax.ShapeDtypeStruct((C, N, _SUBLANES, _LANES), jnp.float32),
            jax.ShapeDtypeStruct((C, N, _SUBLANES, _LANES), jnp.float32),
        ),
        grid=(C, N, tiles_per_chunk),
        in_specs=[
            pl.BlockSpec((1, TR, _LANES), in_index_map),
            pl.BlockSpec((1, TR, _LANES), in_index_map),
        ],
        out_specs=(
            pl.BlockSpec((1, 1, _SUBLANES, _LANES), lambda c, i, j: (c, i, 0, 0)),
            pl.BlockSpec((1, 1, _SUBLANES, _LANES), lambda c, i, j: (c, i, 0, 0)),
        ),
        compiler_params=pltpu.CompilerParams(
            dimension_semantics=("parallel", "parallel", "arbitrary"),
            vmem_limit_bytes=32 * 1024 * 1024,
        ),
    )(logits3, labels3)

    # Tiny finishing reduction + nonlinear loss (C*N*1024 elements) in XLA.
    numer = jnp.sum(numer_part, axis=(0, 2, 3))   # (N,)
    denor = jnp.sum(denor_part, axis=(0, 2, 3))   # (N,)
    loss = 1.0 - (2.0 * numer + smooth) / (denor + smooth)
    if reduction == "mean":
        return jnp.mean(loss)
    if reduction == "sum":
        return jnp.sum(loss)
    return loss   # matches the torch module: any other reduction -> unreduced


def _reference(logits, labels, *, p=1, smooth=1.0, reduction="mean"):
    probs = jax.nn.sigmoid(logits.astype(jnp.float32))
    labels = labels.astype(jnp.float32)
    numer = jnp.sum(probs * labels, axis=(1, 2))
    denor = jnp.sum(probs ** p + labels, axis=(1, 2))
    loss = 1.0 - (2.0 * numer + smooth) / (denor + smooth)
    if reduction == "mean":
        return jnp.mean(loss)
    if reduction == "sum":
        return jnp.sum(loss)
    return loss


if __name__ == "__main__":
    key = jax.random.PRNGKey(0)
    ks = jax.random.split(key, 8)

    def check(out, ref, atol, rtol, name):
        out = jax.block_until_ready(out)
        assert jnp.allclose(out, ref, atol=atol, rtol=rtol), (name, out, ref)

    # Case 1: module defaults (p=1, smooth=1, 'mean'); L=256 -> in-kernel mask.
    N, H, W = 2, 16, 16
    lg1 = jax.random.normal(ks[0], (N, H, W), dtype=jnp.float32)
    lb1 = (jax.random.uniform(ks[1], (N, H, W)) > 0.5).astype(jnp.float32)
    out1 = soft_dice_loss_v1(lg1, lb1, p=1, smooth=1.0, reduction="mean",
                             approx_sigmoid=False)
    check(out1, _reference(lg1, lb1, p=1, smooth=1.0, reduction="mean"),
          1e-5, 1e-5, "case1")

    # Case 2: odd H/W (needs lane padding + mask), p=2, 'sum'.
    lg2 = jax.random.normal(ks[2], (3, 17, 23), dtype=jnp.float32)
    lb2 = (jax.random.uniform(ks[3], (3, 17, 23)) > 0.5).astype(jnp.float32)
    out2 = soft_dice_loss_v1(lg2, lb2, p=2, smooth=1.0, reduction="sum",
                             approx_sigmoid=False)
    check(out2, _reference(lg2, lb2, p=2, smooth=1.0, reduction="sum"),
          1e-5, 1e-5, "case2")

    # Case 3: N=1 with several spatial tiles -> exercises the 2-chunk
    # spatial-parallel (v7x) path, including a fully-masked redundant tile.
    lg3 = jax.random.normal(ks[4], (1, 32, 96), dtype=jnp.float32)   # 3 tiles
    lb3 = (jax.random.uniform(ks[5], (1, 32, 96)) > 0.5).astype(jnp.float32)
    out3 = soft_dice_loss_v1(lg3, lb3, p=1, smooth=1.0, reduction="none",
                             approx_sigmoid=False, max_block_rows=8)
    check(out3, _reference(lg3, lb3, p=1, smooth=1.0, reduction="none"),
          1e-5, 1e-5, "case3")

    # Case 4: bf16 inputs, aligned shape (no pad / no mask), default fast path
    # (EUP approx-reciprocal sigmoid) -> looser tolerance.
    lg4 = jax.random.normal(ks[6], (2, 32, 64), dtype=jnp.bfloat16)
    lb4 = (jax.random.uniform(ks[7], (2, 32, 64)) > 0.5).astype(jnp.bfloat16)
    out4 = soft_dice_loss_v1(lg4, lb4, p=1, smooth=1.0, reduction="mean")
    check(out4, _reference(lg4, lb4, p=1, smooth=1.0, reduction="mean"),
          2e-2, 2e-2, "case4")

    print("KERNEL_OK")
</pallas_src>

<mosaic_0001>
module attributes {stable_mosaic.version = 11 : i64} {
  func.func @_soft_dice_kernel(%arg0: i32, %arg1: i32, %arg2: i32, %arg3: memref<1x8x128xf32, #tpu.memory_space<vmem>>, %arg4: memref<1x8x128xbf16, #tpu.memory_space<vmem>>, %arg5: memref<1x1x8x128xf32, #tpu.memory_space<vmem>>, %arg6: memref<1x1x8x128xf32, #tpu.memory_space<vmem>>) attributes {dimension_semantics = [#tpu.dimension_semantics<parallel>, #tpu.dimension_semantics<parallel>, #tpu.dimension_semantics<arbitrary>], iteration_bounds = array<i64: 1, 2, 1>, scalar_prefetch = 0 : i64, scratch_operands = 0 : i64, tpu.core_type = #tpu.core_type<tc>, window_params = [{transform_indices = @transform_0, window_bounds = array<i64: 1, 8, 128>}, {transform_indices = @transform_1, window_bounds = array<i64: 1, 8, 128>}, {transform_indices = @transform_2, window_bounds = array<i64: 1, 1, 8, 128>}, {transform_indices = @transform_3, window_bounds = array<i64: 1, 1, 8, 128>}]} {
    %c0_i32 = arith.constant 0 : i32
    %0 = arith.cmpi eq, %arg2, %c0_i32 : i32
    %1 = arith.extui %0 : i1 to i32
    %c0_i32_0 = arith.constant 0 : i32
    %2 = arith.cmpi ne, %1, %c0_i32_0 : i32
    scf.if %2 {
      %cst_26 = arith.constant 0.000000e+00 : f32
      %47 = vector.broadcast %cst_26 : f32 to vector<1x1x8x128xf32>
      %c0_27 = arith.constant 0 : index
      %c0_28 = arith.constant 0 : index
      %c0_29 = arith.constant 0 : index
      %c0_30 = arith.constant 0 : index
      %48 = vector.load %arg5[%c0_27, %c0_28, %c0_29, %c0_30] : memref<1x1x8x128xf32, #tpu.memory_space<vmem>>, vector<1x1x8x128xf32>
      tpu.vector_store %arg5[%c0_27, %c0_28, %c0_29, %c0_30], %47 {strides = array<i32>} : memref<1x1x8x128xf32, #tpu.memory_space<vmem>>, vector<1x1x8x128xf32>,
      %cst_31 = arith.constant 0.000000e+00 : f32
      %49 = vector.broadcast %cst_31 : f32 to vector<1x1x8x128xf32>
      %c0_32 = arith.constant 0 : index
      %c0_33 = arith.constant 0 : index
      %c0_34 = arith.constant 0 : index
      %c0_35 = arith.constant 0 : index
      %50 = vector.load %arg6[%c0_32, %c0_33, %c0_34, %c0_35] : memref<1x1x8x128xf32, #tpu.memory_space<vmem>>, vector<1x1x8x128xf32>
      tpu.vector_store %arg6[%c0_32, %c0_33, %c0_34, %c0_35], %49 {strides = array<i32>} : memref<1x1x8x128xf32, #tpu.memory_space<vmem>>, vector<1x1x8x128xf32>,
    } else {
    }
    %c0 = arith.constant 0 : index
    %c0_1 = arith.constant 0 : index
    %c0_2 = arith.constant 0 : index
    %3 = vector.load %arg3[%c0, %c0_1, %c0_2] : memref<1x8x128xf32, #tpu.memory_space<vmem>>, vector<1x8x128xf32>
    %4 = vector.shape_cast %3 : vector<1x8x128xf32> to vector<8x128xf32>
    %c0_3 = arith.constant 0 : index
    %c0_4 = arith.constant 0 : index
    %c0_5 = arith.constant 0 : index
    %5 = vector.load %arg4[%c0_3, %c0_4, %c0_5] : memref<1x8x128xbf16, #tpu.memory_space<vmem>>, vector<1x8x128xbf16>
    %6 = vector.shape_cast %5 : vector<1x8x128xbf16> to vector<8x128xbf16>
    %7 = arith.extf %6 : vector<8x128xbf16> to vector<8x128xf32>
    %8 = arith.negf %4 : vector<8x128xf32>
    %9 = math.exp %8 : vector<8x128xf32>
    %cst = arith.constant 1.000000e+00 : f32
    %10 = vector.broadcast %cst : f32 to vector<8x128xf32>
    %11 = arith.addf %10, %9 : vector<8x128xf32>
    %12 = arith.divf %10, %11 : vector<8x128xf32>
    %13 = arith.mulf %12, %7 : vector<8x128xf32>
    %14 = arith.addf %12, %7 : vector<8x128xf32>
    %c1_i32 = arith.constant 1 : i32
    %15 = arith.muli %arg0, %c1_i32 : i32
    %16 = arith.addi %15, %arg2 : i32
    %17 = tpu.iota {dimensions = array<i32: 0>} : vector<8x128xi32>
    %c8_i32 = arith.constant 8 : i32
    %18 = arith.muli %16, %c8_i32 : i32
    %19 = vector.broadcast %18 : i32 to vector<8x128xi32>
    %20 = arith.addi %17, %19 : vector<8x128xi32>
    %21 = tpu.iota {dimensions = array<i32: 1>} : vector<8x128xi32>
    %c128_i32 = arith.constant 128 : i32
    %22 = vector.broadcast %c128_i32 : i32 to vector<8x128xi32>
    %23 = arith.muli %20, %22 : vector<8x128xi32>
    %24 = arith.addi %23, %21 : vector<8x128xi32>
    %c256_i32 = arith.constant 256 : i32
    %25 = vector.broadcast %c256_i32 : i32 to vector<8x128xi32>
    %26 = arith.cmpi slt, %24, %25 : vector<8x128xi32>
    %cst_6 = arith.constant 0.000000e+00 : f32
    %27 = vector.broadcast %cst_6 : f32 to vector<8x128xf32>
    %28 = arith.select %26, %13, %27 : vector<8x128xi1>, vector<8x128xf32>
    %cst_7 = arith.constant 0.000000e+00 : f32
    %29 = vector.broadcast %cst_7 : f32 to vector<8x128xf32>
    %30 = arith.select %26, %14, %29 : vector<8x128xi1>, vector<8x128xf32>
    %c0_8 = arith.constant 0 : index
    %c0_9 = arith.constant 0 : index
    %c0_10 = arith.constant 0 : index
    %c0_11 = arith.constant 0 : index
    %31 = vector.load %arg5[%c0_8, %c0_9, %c0_10, %c0_11] : memref<1x1x8x128xf32, #tpu.memory_space<vmem>>, vector<1x1x8x128xf32>
    %32 = vector.shape_cast %31 : vector<1x1x8x128xf32> to vector<8x128xf32>
    %33 = vector.shape_cast %28 : vector<8x128xf32> to vector<1x8x128xf32>
    %cst_12 = arith.constant dense<0.000000e+00> : vector<8x128xf32>
    %34 = vector.multi_reduction <add>, %33, %cst_12 [0] : vector<1x8x128xf32> to vector<8x128xf32>
    %35 = arith.addf %32, %34 : vector<8x128xf32>
    %c0_13 = arith.constant 0 : index
    %c0_14 = arith.constant 0 : index
    %c0_15 = arith.constant 0 : index
    %c0_16 = arith.constant 0 : index
    %36 = vector.load %arg5[%c0_13, %c0_14, %c0_15, %c0_16] : memref<1x1x8x128xf32, #tpu.memory_space<vmem>>, vector<1x1x8x128xf32>
    %37 = vector.shape_cast %36 : vector<1x1x8x128xf32> to vector<8x128xf32>
    %38 = vector.shape_cast %35 : vector<8x128xf32> to vector<1x1x8x128xf32>
    tpu.vector_store %arg5[%c0_13, %c0_14, %c0_15, %c0_16], %38 {strides = array<i32>} : memref<1x1x8x128xf32, #tpu.memory_space<vmem>>, vector<1x1x8x128xf32>,
    %c0_17 = arith.constant 0 : index
    %c0_18 = arith.constant 0 : index
    %c0_19 = arith.constant 0 : index
    %c0_20 = arith.constant 0 : index
    %39 = vector.load %arg6[%c0_17, %c0_18, %c0_19, %c0_20] : memref<1x1x8x128xf32, #tpu.memory_space<vmem>>, vector<1x1x8x128xf32>
    %40 = vector.shape_cast %39 : vector<1x1x8x128xf32> to vector<8x128xf32>
    %41 = vector.shape_cast %30 : vector<8x128xf32> to vector<1x8x128xf32>
    %cst_21 = arith.constant dense<0.000000e+00> : vector<8x128xf32>
    %42 = vector.multi_reduction <add>, %41, %cst_21 [0] : vector<1x8x128xf32> to vector<8x128xf32>
    %43 = arith.addf %40, %42 : vector<8x128xf32>
    %c0_22 = arith.constant 0 : index
    %c0_23 = arith.constant 0 : index
    %c0_24 = arith.constant 0 : index
    %c0_25 = arith.constant 0 : index
    %44 = vector.load %arg6[%c0_22, %c0_23, %c0_24, %c0_25] : memref<1x1x8x128xf32, #tpu.memory_space<vmem>>, vector<1x1x8x128xf32>
    %45 = vector.shape_cast %44 : vector<1x1x8x128xf32> to vector<8x128xf32>
    %46 = vector.shape_cast %43 : vector<8x128xf32> to vector<1x1x8x128xf32>
    tpu.vector_store %arg6[%c0_22, %c0_23, %c0_24, %c0_25], %46 {strides = array<i32>} : memref<1x1x8x128xf32, #tpu.memory_space<vmem>>, vector<1x1x8x128xf32>,
    return
  }
  func.func @transform_0(%arg0: i32, %arg1: i32, %arg2: i32) -> (i32, i32, i32) {
    %c1_i32 = arith.constant 1 : i32
    %0 = arith.muli %arg0, %c1_i32 : i32
    %1 = arith.addi %0, %arg2 : i32
    %c0_i32 = arith.constant 0 : i32
    %c0_i32_0 = arith.constant 0 : i32
    return %arg1, %1, %c0_i32 : i32, i32, i32
  }
  func.func @transform_1(%arg0: i32, %arg1: i32, %arg2: i32) -> (i32, i32, i32) {
    %c1_i32 = arith.constant 1 : i32
    %0 = arith.muli %arg0, %c1_i32 : i32
    %1 = arith.addi %0, %arg2 : i32
    %c0_i32 = arith.constant 0 : i32
    %c0_i32_0 = arith.constant 0 : i32
    return %arg1, %1, %c0_i32 : i32, i32, i32
  }
  func.func @transform_2(%arg0: i32, %arg1: i32, %arg2: i32) -> (i32, i32, i32, i32) {
    %c0_i32 = arith.constant 0 : i32
    %c0_i32_0 = arith.constant 0 : i32
    %c0_i32_1 = arith.constant 0 : i32
    return %arg0, %arg1, %c0_i32, %c0_i32_0 : i32, i32, i32, i32
  }
  func.func @transform_3(%arg0: i32, %arg1: i32, %arg2: i32) -> (i32, i32, i32, i32) {
    %c0_i32 = arith.constant 0 : i32
    %c0_i32_0 = arith.constant 0 : i32
    %c0_i32_1 = arith.constant 0 : i32
    return %arg0, %arg1, %c0_i32, %c0_i32_0 : i32, i32, i32, i32
  }
}

</mosaic_0001>

<bundles_post_ra>
// kernel: tpu_custom_call.1
= control target key start
LH: loop header
LB: loop body
LE: loop exit
PB: predicated region body
PF: predicated region fallthrough
CT: control target
= control target key end

     0   :  { %9 = vsyncpa [#allocation3], 0  ;;  %s991_s0 = inlined_call_operand.hbm [shape: f32[2,8,128], index: 0, kind: input, shape index: {}]   ;;  %s992_s1 = inlined_call_operand.hbm [shape: bf16[2,8,128], index: 1, kind: input, shape index: {}]   ;;  %s993_s2 = inlined_call_operand.hbm [shape: f32[1,2,8,128], index: 2, kind: output, shape index: {0}]   ;;  %s994_s3 = inlined_call_operand.hbm [shape: f32[1,2,8,128], index: 3, kind: output, shape index: {1}]  }
   0x1   :  { %11 = vsyncpa [#allocation3 + $0x1], 0 }
   0x2   :  { %12 = vsyncpa [#allocation6], 0 }
   0x3   :  { %14 = vsyncpa [#allocation6 + $0x1], 0 }
   0x4   :  { %15 = vsyncpa [#allocation4], 0 }
   0x5   :  { %17 = vsyncpa [#allocation4 + $0x1], 0 }
   0x6   :  { %18 = vsyncpa [#allocation9], 0 }
   0x7   :  { %20 = vsyncpa [#allocation9 + $0x1], 0  ;;  %s782_s12 = smov 0   ;;  %s784_s13 = smov 0  }
   0x8   :  { %s786_s14 = smov 0   ;;  %s788_s15 = smov 0  }
   0x9   :  { %s790_s16 = smov 0   ;;  %s792_s17 = smov 0  }
   0xa LB: > { %s489_s18 = sadd.s32 4294967295, %s756_s17   ;;  %s490_s19 = sadd.s32 4294967294, %s756_s17   ;;  %s756_s17 = sphi %s792_s17, %s26_s17   ;;  %s752_s16 = sphi %s790_s16, %s1006_s16   ;;  %s748_s15 = sphi %s788_s15, %s1005_s15   ;;  %s744_s14 = sphi %s786_s14, %s1004_s14   ;;  %s740_s13 = sphi %s784_s13, %s1003_s13   ;;  %s736_s12 = sphi %s782_s12, %s1002_s12  }
   0xb   : > { %s41_s20 = sadd.s32 1, %s752_s16  ;;  %s56_s21 = sadd.s32 1, %s744_s14 }
   0xc   : > { %p43_p0 = scmp.ge.s32.totalorder %s41_s20, 2  ;;  %p63_p1 = scmp.ne.s32.totalorder %s744_s14, %s740_s13 }
   0xd   : > { %p64_p2 = scmp.eq.s32.totalorder %s756_s17, 0  ;;  %p69_p3 = scmp.ne.s32.totalorder %s740_s13, %s736_s12 }
   0xe   : > { %s1008_s20 = smov (%p43_p0, %s41_s20), 0  ;;  %p70_p5 = scmp.eq.s32.totalorder %s489_s18, 0 }
   0xf   : > { %p823_p4 = por %p64_p2, %p63_p1  ;;  %s51_s23 = ssub.s32 %s752_s16, %s1008_s20 }
  0x10   : > { %p125_p6 = scmp.eq.s32.totalorder %s489_s18, 1  ;;  %p54_p7 = scmp.eq.s32.totalorder %s51_s23, 0 }
  0x11   : > { %p829_p8 = por %p70_p5, %p69_p3  ;;  %p131_p10 = scmp.eq.s32.totalorder %s490_s19, 1 }
  0x12   : > { %p833_p9 = por %p125_p6, %p63_p1  ;;  %p531_p13 = scmp.lt.s32.totalorder %s756_s17, 2 }
  0x13   : > { %s838_s26 = scalar_select %p54_p7, %s744_s14, %s56_s21  }
  0x14   : > { %p840_p11 = por %p131_p10, %p69_p3  ;;  %s847_s28 = sand.u32 1, %s744_s14  }
  0x15   : > { %s493_s29 = sshll.u32 %s847_s28, 3  ;;  %s494_s30 = sshll.u32 %s752_s16, 7 }
  0x16   : > { %s190_s6 = scalar_lea.hbm %s991_s0, %s494_s30  ;;  %s183_s7 = scalar_lea.vmem [#allocation2], %s493_s29 }
  0x17   : > { %s192_s8 = sshll.u32 %s183_s7, 4  ;;  %p856_p0 = pnand %p531_p13, %p823_p4  ;;  %s193_s8 = int_to_ptr.vmem [resolvable:$true] %s192_s8 }
  0x18   : > { %p497_p1 = scmp.ge.s32.totalorder %s756_s17, 1  ;;  %p217_p2 = scmp.lt.s32.totalorder %s756_s17, 3 }
  0x19   : > { %s180_s10 = scalar_lea.sflag [#allocation3], %s847_s28  ;;  %p588_p3 = pneg %p856_p0 }
  0x1a   : > { %s599_s11 = scalar_lea.vmem %s193_s8, 128  ;;  %s758_s18 = smov [#allocation2]  }
  0x1b   : > { %p600_p5 = scmp.ne.s32.totalorder %s193_s8, %s599_s11  ;;  %s604_s19 = sshll.u32 %s758_s18, 4  ;;  %s605_s19 = int_to_ptr.vmem [resolvable:$false] %s604_s19 }
  0x1c   : > { %s606_s21 = scalar_lea.vmem %s605_s19, 256  ;;  %p607_p4 = scmp.lt.s32.totalorder %s193_s8, %s605_s19 }
  0x1d   : > { %p602_p6 = pnand %p600_p5, %p588_p3  ;;  %p608_p10 = scmp.lt.s32.totalorder %s606_s21, %s599_s11 }
  0x1f   : > { %p603_p7 = pneg %p602_p6  ;;  %p609_p13 = por %p608_p10, %p607_p4 }
  0x21   : > { %p610_p12 = pnand %p609_p13, %p603_p7 }
  0x23   : > { %613 = shalt.err (!%p610_p12)
}
  0x24   : > { %520 = dma.hbm_to_vmem [thread:$0]  (!%p856_p0), %s190_s6, 128, %s193_s8, %s180_s10  }
  0x25   : > { %p874_p5 = pnand %p497_p1, %p217_p2  ;;  %s495_s23 = sshll.u32 %s847_s28, 2 }
  0x26   : > { %s496_s29 = sshll.u32 %s752_s16, 6  ;;  %s203_s7 = scalar_lea.vmem [#allocation5], %s495_s23 }
  0x27   : > { %s210_s5 = scalar_lea.hbm %s992_s1, %s496_s29  ;;  %s212_s11 = sshll.u32 %s203_s7, 4  ;;  %s213_s11 = int_to_ptr.vmem [resolvable:$true] %s212_s11 }
  0x28   : > { %s200_s18 = scalar_lea.sflag [#allocation6], %s847_s28  ;;  %s627_s19 = scalar_lea.vmem %s213_s11, 64 }
  0x29   : > { %p628_p12 = scmp.ne.s32.totalorder %s213_s11, %s627_s19  ;;  %s759_s6 = smov [#allocation5]  }
  0x2a   : > { %s632_s8 = sshll.u32 %s759_s6, 4  ;;  %s633_s8 = int_to_ptr.vmem [resolvable:$false] %s632_s8 }
  0x2b   : > { %p630_p6 = pnand %p628_p12, %p588_p3  ;;  %s634_s10 = scalar_lea.vmem %s633_s8, 128 }
  0x2c   : > { %p635_p1 = scmp.lt.s32.totalorder %s213_s11, %s633_s8  ;;  %p636_p2 = scmp.lt.s32.totalorder %s634_s10, %s627_s19 }
  0x2d   : > { %p631_p7 = pneg %p630_p6 }
  0x2e   : > { %p637_p4 = por %p636_p2, %p635_p1 }
  0x30   : > { %p638_p10 = pnand %p637_p4, %p631_p7 }
  0x32   : > { %641 = shalt.err (!%p638_p10)
}
  0x33   : > { %523 = dma.hbm_to_vmem [thread:$0]  (!%p856_p0), %s210_s5, 64, %s213_s11, %s200_s18  }
  0x34   : > { %221 = sbr.rel (%p874_p5) target bundleno = 132 (0x84), region = 28  ;;  %s892_s28 = sand.u32 (!%p874_p5), 1, %s740_s13  }
  0x35   : > { %s895_s21 = sshll.u32 (!%p874_p5), %s892_s28, 3  ;;  %s224_s23 = scalar_lea.sflag (!%p874_p5), [#allocation3], %s892_s28 }
  0x36   : > { %s227_s29 = scalar_lea.vmem (!%p874_p5), [#allocation2], %s895_s21 }
  0x39   : > { %719 = dma.done.wait (%p829_p8), %s224_s23, 128  }
  0x3a   : > { %721 = vsyncadd (%p829_p8), %s224_s23, 4294967168  ;;  %s499_s9 = sshll.u32 %s892_s28, 2  ;;  %s233_s22 = scalar_lea.sflag [#allocation6], %s892_s28 }
  0x3b   : > { %s236_s30 = scalar_lea.vmem [#allocation5], %s499_s9 }
  0x3c   : > { %723 = dma.done.wait (%p829_p8), %s233_s22, 64  }
  0x3d   : > { %725 = vsyncadd (%p829_p8), %s233_s22, 4294967232  ;;  %v277_v0 = vld [vmem:[%s227_s29] sm:$0xff]  ;;  %v289_v3 = vlaneseq  ;;  %v278_v8 = vld [vmem:[%s236_s30] sm:$0xf]  ;;  %s505_s24 = sshll.u32 %s748_s15, 7  ;;  %s261_s4 = scalar_lea.vmem [#allocation7], %s895_s21 }
  0x3e   : > { %v502_v1 = vmul.f32 -1.442695, %v277_v0  ;;  %v279_v10 = vunpack.c.l.bf16 %v278_v8  ;;  %s330_s5 = sshll.u32 %s261_s4, 4  ;;  %s268_s7 = scalar_lea.vmem [#allocation8], %s895_s21  ;;  %s917_s5 = int_to_ptr.vmem [resolvable:$true] %s330_s5 }
  0x3f   : > { %v290_v5 = vshrl.u32 %v289_v3, 7  ;;  %v295_v6 = vand.u32 127, %v289_v3  ;;  %s345_s11 = sshll.u32 %s268_s7, 4  ;;  %s915_s6 = scalar_lea.hbm %s993_s2, %s505_s24  ;;  %s924_s11 = int_to_ptr.vmem [resolvable:$true] %s345_s11 }
  0x40   : > { %582 = vpow2.f32 %v502_v1  ;;  %s922_s15 = scalar_lea.hbm %s994_s3, %s505_s24  ;;  %s310_s21 = scalar_lea.sflag [#allocation4], %s892_s28 }
  0x41   : > { %v296_v7 = vmul.u32 128, %v290_v5  ;;  %s642_s23 = scalar_lea.vmem %s917_s5, 128  ;;  %s760_s29 = smov [#allocation7]  }
  0x42   : > { %p643_p8 = scmp.ne.s32.totalorder %s917_s5, %s642_s23  ;;  %s646_s9 = sshll.u32 %s760_s29, 4  ;;  %s647_s9 = int_to_ptr.vmem [resolvable:$false] %s646_s9 }
  0x43   : > { %v297_v9 = vadd.s32 %v296_v7, %v295_v6  ;;  %s648_s22 = scalar_lea.vmem %s647_s9, 256  ;;  %p649_p13 = scmp.lt.s32.totalorder %s917_s5, %s647_s9 }
  0x44   : > { %p644_p0 = pnand %p643_p8, %p833_p9  ;;  %p650_p5 = scmp.lt.s32.totalorder %s648_s22, %s642_s23 }
  0x45   : > { %vm298_vm0 = vcmp.lt.s32.totalorder %v297_v9, 256 }
  0x46   : > { %p645_p3 = pneg %p644_p0  ;;  %p651_p12 = por %p650_p5, %p649_p13 }
  0x48   : > { %p652_p6 = pnand %p651_p12, %p645_p3 }
  0x4d   : > { %v583_v2 = vpop.eup %582 }
  0x4e   : > { %v283_v4 = vadd.f32 1.0, %v583_v2 }
  0x50   : > { %584 = vrcp.f32 %v283_v4 }
  0x5d   : > { %v585_v11 = vpop.eup %584 }
  0x5e   : > { %v286_v12 = vmul.f32 %v585_v11, %v279_v10  ;;  %v287_v13 = vadd.f32 %v585_v11, %v279_v10 }
  0x60   : > { %v299_v14 = vsel %vm298_vm0, %v286_v12, 0.0  ;;  %v300_v15 = vsel %vm298_vm0, %v287_v13, 0.0 }
  0x61   : > { %304 = vst [vmem:[%s261_s4] sm:$0xff] %v299_v14  ;;  %308 = vst [vmem:[%s268_s7] sm:$0xff] %v300_v15 }
  0x62   : > { %655 = shalt.err (!%p652_p6)
}
  0x63   : > { %s656_s30 = scalar_lea.hbm %s915_s6, 128  ;;  %s660_s7 = scalar_lea.hbm %s993_s2, 256 }
  0x64   : > { %p657_p7 = scmp.ne.s32.totalorder %s915_s6, %s656_s30  ;;  %p661_p4 = scmp.lt.s32.totalorder %s915_s6, %s993_s2 }
  0x65   : > { %p662_p10 = scmp.lt.s32.totalorder %s660_s7, %s656_s30 }
  0x66   : > { %p658_p1 = pnand %p657_p7, %p833_p9 }
  0x67   : > { %p663_p8 = por %p662_p10, %p661_p4 }
  0x68   : > { %p659_p2 = pneg %p658_p1 }
  0x6a   : > { %p664_p0 = pnand %p663_p8, %p659_p2 }
  0x6c   : > { %667 = shalt.err (!%p664_p0)
}
  0x6d   : > { %513 = dma.vmem_to_hbm [thread:$0]  (%p833_p9), %s917_s5, 128, %s915_s6, %s310_s21  }
  0x6e   : > { %s315_s8 = scalar_lea.sflag [#allocation9], %s892_s28  ;;  %s668_s10 = scalar_lea.vmem %s924_s11, 128 }
  0x6f   : > { %p669_p3 = scmp.ne.s32.totalorder %s924_s11, %s668_s10  ;;  %s761_s23 = smov [#allocation8]  }
  0x70   : > { %s672_s29 = sshll.u32 %s761_s23, 4  ;;  %s673_s29 = int_to_ptr.vmem [resolvable:$false] %s672_s29 }
  0x71   : > { %p670_p13 = pnand %p669_p3, %p833_p9  ;;  %s674_s9 = scalar_lea.vmem %s673_s29, 256 }
  0x72   : > { %p675_p12 = scmp.lt.s32.totalorder %s924_s11, %s673_s29  ;;  %p676_p6 = scmp.lt.s32.totalorder %s674_s9, %s668_s10 }
  0x73   : > { %p671_p5 = pneg %p670_p13 }
  0x74   : > { %p677_p7 = por %p676_p6, %p675_p12 }
  0x76   : > { %p678_p1 = pnand %p677_p7, %p671_p5 }
  0x78   : > { %681 = shalt.err (!%p678_p1)
}
  0x79   : > { %s682_s5 = scalar_lea.hbm %s922_s15, 128  ;;  %s686_s21 = scalar_lea.hbm %s994_s3, 256 }
  0x7a   : > { %p683_p2 = scmp.ne.s32.totalorder %s922_s15, %s682_s5  ;;  %p687_p8 = scmp.lt.s32.totalorder %s922_s15, %s994_s3 }
  0x7b   : > { %p688_p0 = scmp.lt.s32.totalorder %s686_s21, %s682_s5 }
  0x7c   : > { %p684_p4 = pnand %p683_p2, %p833_p9 }
  0x7d   : > { %p689_p3 = por %p688_p0, %p687_p8 }
  0x7e   : > { %p685_p10 = pneg %p684_p4 }
  0x80   : > { %p690_p13 = pnand %p689_p3, %p685_p10 }
  0x82   : > { %693 = shalt.err (!%p690_p13)
}
  0x83   : > { %514 = dma.vmem_to_hbm [thread:$0]  (%p833_p9), %s924_s11, 128, %s922_s15, %s315_s8  }
  0x84 PF: > { %s357_s24 = sand.u32 1, %s736_s12   ;;  %p1001_p5 = scmp.ge.s32.totalorder %s756_s17, 2 }
  0x85   : > { %s358_s4 = scalar_lea.sflag [#allocation4], %s357_s24 }
  0x86   : > { %p525_p12 = pnand %p1001_p5, %p840_p11 }
  0x88   : > { %p526_p6 = pneg %p525_p12 }
  0x8a   : > { %727 = dma.done.wait (%p526_p6), %s358_s4, 128  }
  0x8b   : > { %729 = vsyncadd (%p526_p6), %s358_s4, 4294967168  ;;  %s367_s7 = scalar_lea.sflag [#allocation9], %s357_s24 }
  0x8c   : > { %731 = dma.done.wait (%p526_p6), %s367_s7, 128  }
  0x8d   : > { %733 = vsyncadd (%p526_p6), %s367_s7, 4294967168  ;;  %s26_s17 = sadd.s32 1, %s756_s17   ;;  %s1002_s12 = smov %s740_s13 }
  0x8e   : > { %p23_p7 = scmp.ge.s32.totalorder %s26_s17, 4   ;;  %s1003_s13 = smov %s744_s14 }
  0x8f   : > { %s1004_s14 = smov %s838_s26  ;;  %s1005_s15 = smov %s752_s16 }
  0x90   : > { %s1006_s16 = smov %s1008_s20  ;;  %25 = sbr.rel (!%p23_p7) target bundleno = 10 (0xa), region = 107 }
  0x95   :  { %372 = vsyncpa [#allocation3], 1 }
  0x96   :  { %374 = vsyncpa [#allocation3 + $0x1], 1 }
  0x97   :  { %375 = vsyncpa [#allocation6], 1 }
  0x98   :  { %377 = vsyncpa [#allocation6 + $0x1], 1 }
  0x99   :  { %378 = vsyncpa [#allocation4], 1 }
  0x9a   :  { %380 = vsyncpa [#allocation4 + $0x1], 1 }
  0x9b   :  { %381 = vsyncpa [#allocation9], 1 }
  0x9c   :  { %383 = vsyncpa [#allocation9 + $0x1], 1 }

</bundles_post_ra>
